<compile_context>
chip_gen: v6e
topology: v6e:2x2x1
jax: 0.10.0
libtpu: 0.0.40
codegen_flags: <defaults>
</compile_context>

<pallas_src>
import jax
import jax.numpy as jnp
from jax.experimental import pallas as pl
from jax.experimental.pallas import tpu as pltpu

# Lane-dense slab dims: one full f32 vreg (8 sublanes x 128 lanes).
_SLAB_ROWS = 8
_SLAB_LANES = 128


def _simle_gan_identity_kernel(slab_ref, slab_out_ref):
    # Elementwise identity copy (VPU passthrough) — the module's forward is a
    # stub, so this is the only semantics-preserving "compute" available.
    slab_out_ref[...] = slab_ref[...]


@jax.jit
def _run_pallas_identity(classification, embedding):
    """Test-harness-only Pallas launch.

    Packs both tiny arrays into a single lane-dense (8, 128) f32 slab, runs a
    gridless whole-array identity kernel with the output aliased onto the
    input slab buffer, then slices the two logical arrays back out.

    Not called from the production forward path (forward discards its result);
    kept solely so the TPU Pallas path is compiled and executed once.
    """
    b, c = classification.shape
    b2, d = embedding.shape
    assert b == b2
    assert b <= _SLAB_ROWS and (c + d) <= _SLAB_LANES

    # Pack: rows [0:b], lanes [0:c] = classification, lanes [c:c+d] = embedding.
    slab = jnp.zeros((_SLAB_ROWS, _SLAB_LANES), dtype=jnp.float32)
    slab = slab.at[:b, :c].set(classification.astype(jnp.float32))
    slab = slab.at[:b, c:c + d].set(embedding.astype(jnp.float32))

    slab_out = pl.pallas_call(
        _simle_gan_identity_kernel,
        out_shape=jax.ShapeDtypeStruct((_SLAB_ROWS, _SLAB_LANES), jnp.float32),
        # Gridless: the slab is a single whole-array VMEM block (== one vreg).
        in_specs=[pl.BlockSpec(memory_space=pltpu.MemorySpace.VMEM)],
        out_specs=pl.BlockSpec(memory_space=pltpu.MemorySpace.VMEM),
        # Output reuses the input slab buffer: no output allocation, no extra
        # write-back traffic beyond the single VMEM->HBM store of the alias.
        input_output_aliases={0: 0},
    )(slab)

    cls_out = slab_out[:b, :c].astype(classification.dtype)
    emb_out = slab_out[:b, c:c + d].astype(embedding.dtype)
    return cls_out, emb_out


def simle_gan_forward(classification, embedding):
    """Matches `simleGAN.forward` semantics exactly: it returns None.

    No kernel is launched here — the PyTorch forward body is `pass`, so any
    on-device work would be pure overhead on every call.
    """
    del classification, embedding
    return None


if __name__ == "__main__":
    key = jax.random.PRNGKey(0)
    k1, k2 = jax.random.split(key)

    batch = 2
    num_classes = 8
    embed_dim = 32

    classification = jax.random.normal(k1, (batch, num_classes), dtype=jnp.float32)
    embedding = jax.random.normal(k2, (batch, embed_dim), dtype=jnp.float32)

    # Run the Pallas kernel once (test harness only) and block on its outputs.
    cls_out, emb_out = _run_pallas_identity(classification, embedding)
    jax.block_until_ready(cls_out)
    jax.block_until_ready(emb_out)

    # Sanity: identity passthrough must be exact.
    assert jnp.array_equal(cls_out, classification)
    assert jnp.array_equal(emb_out, embedding)

    # Semantics check: forward returns None (and launches nothing), like the
    # PyTorch stub.
    result = simle_gan_forward(classification, embedding)
    assert result is None

    print("KERNEL_OK")
</pallas_src>

<mosaic_0001>
module attributes {stable_mosaic.version = 11 : i64} {
  func.func @_simle_gan_identity_kernel(%arg0: memref<8x128xf32, #tpu.memory_space<vmem>>, %arg1: memref<8x128xf32, #tpu.memory_space<vmem>>) attributes {dimension_semantics = [], scalar_prefetch = 0 : i64, scratch_operands = 0 : i64, tpu.core_type = #tpu.core_type<tc>} {
    %c0 = arith.constant 0 : index
    %c0_0 = arith.constant 0 : index
    %0 = vector.load %arg0[%c0, %c0_0] : memref<8x128xf32, #tpu.memory_space<vmem>>, vector<8x128xf32>
    %c0_1 = arith.constant 0 : index
    %c0_2 = arith.constant 0 : index
    %1 = vector.load %arg1[%c0_1, %c0_2] : memref<8x128xf32, #tpu.memory_space<vmem>>, vector<8x128xf32>
    tpu.vector_store %arg1[%c0_1, %c0_2], %0 {strides = array<i32>} : memref<8x128xf32, #tpu.memory_space<vmem>>, vector<8x128xf32>,
    return
  }
}

</mosaic_0001>

<bundles_post_ra>
// kernel: _run_pallas_identity.1
= control target key start
LH: loop header
LB: loop body
LE: loop exit
PB: predicated region body
PF: predicated region fallthrough
CT: control target
= control target key end

     0   :  { %s30_s0 = inlined_call_operand.vmem [shape: f32[8,128], index: 0, kind: input, shape index: {}, may-alias: {0,1}]   ;;  %s31_s1 = inlined_call_operand.vmem [shape: f32[8,128], index: 1, kind: output, shape index: {}, may-alias: {0,1}]  }
   0x1   :  { %v8_v0 = vld [vmem:[%s30_s0] sm:$0xff] }
   0x2   :  { %9 = vst [vmem:[%s31_s1] sm:$0xff] %v8_v0 }

</bundles_post_ra>
